<compile_context>
chip_gen: v6e
topology: v6e:2x2x1
jax: 0.10.0
libtpu: 0.0.40
codegen_flags: <defaults>
</compile_context>

<pallas_src>
import jax
import jax.numpy as jnp
from jax import lax
from jax.experimental import pallas as pl
from jax.experimental.pallas import tpu as pltpu

BN_EPS = 1e-5
LANE = 128
_VMEM = pl.BlockSpec(memory_space=pltpu.MemorySpace.VMEM)


def _round_up(v, m):
    return -(-v // m) * m


def _pad2(a, rows, cols):
    return jnp.pad(a, ((0, rows - a.shape[0]), (0, cols - a.shape[1])))


# ----------------------------------------------------------------------------
# One fused kernel for the whole forward pass (grid-less, VMEM-resident)
# ----------------------------------------------------------------------------
def _gnn_fused_kernel(x_ref, adj_ref, dis_ref,
                      w1_ref, b1_ref, g1_ref, be1_ref,
                      w2_ref, b2_ref, g2_ref, be2_ref,
                      w3_ref, b3_ref, g3_ref, be3_ref,
                      out_ref):
    """Per layer (B == 1, as the reference reshape((N, -1)) implies):

        h = D^{-1/2} (A + I) D^{-1/2} (h @ W) + bias      # dense GCN conv
        h = relu(h)
        h = (h - mean) * (gamma * rsqrt(var + eps)) + beta  # BN1d (train)
    """
    adj = adj_ref[...]    # (N, N) bf16, diagonal forced to 1 (lossless 0/1)
    dis = dis_ref[...]    # (N, 1) f32, deg^{-1/2} (clamped)

    def layer(h, w_ref, b_ref, g_ref, be_ref):
        # Feature lift: small matmul, kept f32 for accuracy (cost negligible
        # next to the NxN aggregation).
        h = jnp.dot(h, w_ref[...], preferred_element_type=jnp.float32)
        # Symmetric-normalized aggregation factored as dis * (A_sl @ (dis*h)):
        # both MXU operands in bf16 (native MXU path), f32 accumulator.
        hn = (dis * h).astype(jnp.bfloat16)
        h = dis * jnp.dot(adj, hn,
                          preferred_element_type=jnp.float32) + b_ref[...]
        h = jnp.maximum(h, 0.0)                               # ReLU
        # BatchNorm1d over the node axis (training-mode batch statistics),
        # gamma folded into the rsqrt scale (saves one (N,C) multiply).
        mean = jnp.mean(h, axis=0, keepdims=True)
        d = h - mean
        var = jnp.mean(d * d, axis=0, keepdims=True)          # biased variance
        scale = g_ref[...] * lax.rsqrt(var + BN_EPS)          # EUP rsqrt
        return d * scale + be_ref[...]

    h = layer(x_ref[...], w1_ref, b1_ref, g1_ref, be1_ref)
    h = layer(h, w2_ref, b2_ref, g2_ref, be2_ref)
    h = layer(h, w3_ref, b3_ref, g3_ref, be3_ref)
    out_ref[...] = h


# ----------------------------------------------------------------------------
# Wrapper: adjacency prep + lane padding under the same jit, one pallas_call
# ----------------------------------------------------------------------------
def gnn_forward(x, adj, params):
    # Accept (1, N, C)/(1, N, N) or already-squeezed 2-D inputs.
    if x.ndim == 3:
        x = x[0]
    if adj.ndim == 3:
        adj = adj[0]
    x = x.astype(jnp.float32)
    adj = adj.astype(jnp.float32)

    n, c_in = x.shape
    c_h1 = params['w1'].shape[1]
    c_h2 = params['w2'].shape[1]
    c_out = params['w3'].shape[1]
    p_in, p_h1, p_h2, p_out = (_round_up(c, LANE)
                               for c in (c_in, c_h1, c_h2, c_out))

    # Adjacency prep shared by all 3 layers, done once by XLA under this jit
    # so the kernel holds exactly ONE bf16 NxN operand in VMEM (no iotas, no
    # f32 duplicate): force self-loops on the diagonal (DenseGCNConv
    # semantics: diag overwritten to 1), deg^{-1/2} clamped at 1.
    eye = jnp.eye(n, dtype=jnp.float32)
    adj_sl = adj * (1.0 - eye) + eye
    deg = jnp.sum(adj_sl, axis=-1, keepdims=True)
    dis = lax.rsqrt(jnp.maximum(deg, 1.0))
    adj_bf = adj_sl.astype(jnp.bfloat16)                  # 0/1: lossless cast

    # Lane-dense padding of the tiny feature dims to 128.  Padded lanes stay
    # exactly zero through every conv/ReLU/BN stage, so results are unchanged;
    # padding is sliced off after the call.
    x_p = _pad2(x, n, p_in)
    args = (
        x_p, adj_bf, dis,
        _pad2(params['w1'], p_in, p_h1), _pad2(params['b1'], 1, p_h1),
        _pad2(params['bn1_g'], 1, p_h1), _pad2(params['bn1_b'], 1, p_h1),
        _pad2(params['w2'], p_h1, p_h2), _pad2(params['b2'], 1, p_h2),
        _pad2(params['bn2_g'], 1, p_h2), _pad2(params['bn2_b'], 1, p_h2),
        _pad2(params['w3'], p_h2, p_out), _pad2(params['b3'], 1, p_out),
        _pad2(params['bn3_g'], 1, p_out), _pad2(params['bn3_b'], 1, p_out),
    )

    # Working-set estimate -> explicit scoped-VMEM limit (default is only
    # 16 MiB on v5e, 32 MiB on v6e/v7x); clamp at 64 MiB (v7x physical VMEM).
    c_max = max(p_h1, p_h2, p_out)
    work = (2 * n * n                      # bf16 adjacency
            + 4 * n                        # dis
            + 4 * n * (p_in + 4 * c_max)   # x + live activations/temps
            + 4 * (p_in * p_h1 + p_h1 * p_h2 + p_h2 * p_out)
            + 4 * 12 * c_max)              # biases / gamma / beta
    vmem_limit = int(min(64 * 2**20, max(2 * work + (4 << 20), 32 << 20)))

    flops = (2 * n * (p_in * p_h1 + p_h1 * p_h2 + p_h2 * p_out)
             + 2 * n * n * (p_h1 + p_h2 + p_out))
    bytes_accessed = (2 * n * n + 4 * n * (p_in + p_out) + 4 * n
                      + 4 * (p_in * p_h1 + p_h1 * p_h2 + p_h2 * p_out))

    out = pl.pallas_call(
        _gnn_fused_kernel,
        out_shape=jax.ShapeDtypeStruct((n, p_out), jnp.float32),
        in_specs=[_VMEM] * len(args),
        out_specs=_VMEM,
        compiler_params=pltpu.CompilerParams(vmem_limit_bytes=vmem_limit),
        cost_estimate=pl.CostEstimate(flops=flops,
                                      transcendentals=3 * c_max,
                                      bytes_accessed=bytes_accessed),
    )(*args)

    # Drop the lane padding outside the kernel (store inside stays lane-dense).
    return out[:, :c_out]


gnn_forward_jit = jax.jit(gnn_forward)


# ----------------------------------------------------------------------------
# Parameter init (deterministic; mirrors the module's layer shapes & defaults)
# ----------------------------------------------------------------------------
def _glorot(key, fan_in, fan_out):
    limit = (6.0 / (fan_in + fan_out)) ** 0.5
    # stored (in, out) so the kernel does h @ W directly
    return jax.random.uniform(key, (fan_in, fan_out), jnp.float32, -limit, limit)


def init_params(key, in_channels, hidden_channels, out_channels):
    keys = jax.random.split(key, 3)
    dims = [(in_channels, hidden_channels),
            (hidden_channels, hidden_channels),
            (hidden_channels, out_channels)]
    p = {}
    for i, (fi, fo) in enumerate(dims, start=1):
        p[f'w{i}'] = _glorot(keys[i - 1], fi, fo)
        p[f'b{i}'] = jnp.zeros((1, fo), jnp.float32)      # GCNConv bias (zeros)
        p[f'bn{i}_g'] = jnp.ones((1, fo), jnp.float32)    # BatchNorm1d weight
        p[f'bn{i}_b'] = jnp.zeros((1, fo), jnp.float32)   # BatchNorm1d bias
    return p


# ----------------------------------------------------------------------------
# Demo
# ----------------------------------------------------------------------------
if __name__ == "__main__":
    N, IN_C, HID_C, OUT_C = 16, 8, 32, 16   # nodes, in/hidden/out channels

    key = jax.random.PRNGKey(0)
    kx, ka, kp = jax.random.split(key, 3)

    x = jax.random.normal(kx, (1, N, IN_C), jnp.float32)
    # symmetric 0/1 adjacency; self-loops are forced on the diagonal anyway
    raw = (jax.random.uniform(ka, (N, N)) > 0.6).astype(jnp.float32)
    adj = jnp.clip(raw + raw.T, 0.0, 1.0)[None]            # (1, N, N)

    params = init_params(kp, IN_C, HID_C, OUT_C)

    out = gnn_forward_jit(x, adj, params)
    jax.block_until_ready(out)
    assert out.shape == (N, OUT_C)
    assert bool(jnp.all(jnp.isfinite(out)))
    print("KERNEL_OK")
</pallas_src>

<mosaic_0001>
module attributes {stable_mosaic.version = 11 : i64} {
  func.func @_gnn_fused_kernel(%arg0: memref<16x128xf32, #tpu.memory_space<vmem>>, %arg1: memref<16x16xbf16, #tpu.memory_space<vmem>>, %arg2: memref<16x1xf32, #tpu.memory_space<vmem>>, %arg3: memref<128x128xf32, #tpu.memory_space<vmem>>, %arg4: memref<1x128xf32, #tpu.memory_space<vmem>>, %arg5: memref<1x128xf32, #tpu.memory_space<vmem>>, %arg6: memref<1x128xf32, #tpu.memory_space<vmem>>, %arg7: memref<128x128xf32, #tpu.memory_space<vmem>>, %arg8: memref<1x128xf32, #tpu.memory_space<vmem>>, %arg9: memref<1x128xf32, #tpu.memory_space<vmem>>, %arg10: memref<1x128xf32, #tpu.memory_space<vmem>>, %arg11: memref<128x128xf32, #tpu.memory_space<vmem>>, %arg12: memref<1x128xf32, #tpu.memory_space<vmem>>, %arg13: memref<1x128xf32, #tpu.memory_space<vmem>>, %arg14: memref<1x128xf32, #tpu.memory_space<vmem>>, %arg15: memref<16x128xf32, #tpu.memory_space<vmem>>) attributes {dimension_semantics = [], scalar_prefetch = 0 : i64, scratch_operands = 0 : i64, tpu.core_type = #tpu.core_type<tc>} {
    %c0 = arith.constant 0 : index
    %c0_0 = arith.constant 0 : index
    %0 = vector.load %arg1[%c0, %c0_0] : memref<16x16xbf16, #tpu.memory_space<vmem>>, vector<16x16xbf16>
    %c0_1 = arith.constant 0 : index
    %c0_2 = arith.constant 0 : index
    %1 = vector.load %arg2[%c0_1, %c0_2] : memref<16x1xf32, #tpu.memory_space<vmem>>, vector<16x1xf32>
    %c0_3 = arith.constant 0 : index
    %c0_4 = arith.constant 0 : index
    %2 = vector.load %arg0[%c0_3, %c0_4] : memref<16x128xf32, #tpu.memory_space<vmem>>, vector<16x128xf32>
    %c0_5 = arith.constant 0 : index
    %c0_6 = arith.constant 0 : index
    %3 = vector.load %arg3[%c0_5, %c0_6] : memref<128x128xf32, #tpu.memory_space<vmem>>, vector<128x128xf32>
    %cst = arith.constant dense<0.000000e+00> : vector<16x128xf32>
    %4 = tpu.matmul %2, %3, %cst {dimension_numbers = #tpu.dot_dimension_numbers<[1], [0], [0], [1], [0, 0, 1, 1], [], []>} : vector<16x128xf32>, vector<128x128xf32>, vector<16x128xf32> -> vector<16x128xf32>
    %5 = vector.broadcast %1 : vector<16x1xf32> to vector<16x128xf32>
    %6 = arith.mulf %5, %4 : vector<16x128xf32>
    %7 = arith.truncf %6 : vector<16x128xf32> to vector<16x128xbf16>
    %cst_7 = arith.constant dense<0.000000e+00> : vector<16x128xf32>
    %8 = tpu.matmul %0, %7, %cst_7 {dimension_numbers = #tpu.dot_dimension_numbers<[1], [0], [0], [1], [0, 0, 1, 1], [], []>} : vector<16x16xbf16>, vector<16x128xbf16>, vector<16x128xf32> -> vector<16x128xf32>
    %9 = vector.broadcast %1 : vector<16x1xf32> to vector<16x128xf32>
    %10 = arith.mulf %9, %8 : vector<16x128xf32>
    %c0_8 = arith.constant 0 : index
    %c0_9 = arith.constant 0 : index
    %11 = vector.load %arg4[%c0_8, %c0_9] : memref<1x128xf32, #tpu.memory_space<vmem>>, vector<1x128xf32>
    %12 = vector.broadcast %11 : vector<1x128xf32> to vector<16x128xf32>
    %13 = arith.addf %10, %12 : vector<16x128xf32>
    %cst_10 = arith.constant 0.000000e+00 : f32
    %14 = vector.broadcast %cst_10 : f32 to vector<16x128xf32>
    %15 = arith.maximumf %13, %14 : vector<16x128xf32>
    %cst_11 = arith.constant dense<0.000000e+00> : vector<128xf32>
    %16 = vector.multi_reduction <add>, %15, %cst_11 [0] : vector<16x128xf32> to vector<128xf32>
    %17 = vector.shape_cast %16 : vector<128xf32> to vector<1x128xf32>
    %cst_12 = arith.constant 1.600000e+01 : f32
    %18 = vector.broadcast %cst_12 : f32 to vector<1x128xf32>
    %19 = arith.divf %17, %18 : vector<1x128xf32>
    %20 = vector.broadcast %19 : vector<1x128xf32> to vector<16x128xf32>
    %21 = arith.subf %15, %20 : vector<16x128xf32>
    %22 = arith.mulf %21, %21 : vector<16x128xf32>
    %cst_13 = arith.constant dense<0.000000e+00> : vector<128xf32>
    %23 = vector.multi_reduction <add>, %22, %cst_13 [0] : vector<16x128xf32> to vector<128xf32>
    %24 = vector.shape_cast %23 : vector<128xf32> to vector<1x128xf32>
    %cst_14 = arith.constant 1.600000e+01 : f32
    %25 = vector.broadcast %cst_14 : f32 to vector<1x128xf32>
    %26 = arith.divf %24, %25 : vector<1x128xf32>
    %c0_15 = arith.constant 0 : index
    %c0_16 = arith.constant 0 : index
    %27 = vector.load %arg5[%c0_15, %c0_16] : memref<1x128xf32, #tpu.memory_space<vmem>>, vector<1x128xf32>
    %cst_17 = arith.constant 9.99999974E-6 : f32
    %28 = vector.broadcast %cst_17 : f32 to vector<1x128xf32>
    %29 = arith.addf %26, %28 : vector<1x128xf32>
    %30 = math.rsqrt %29 : vector<1x128xf32>
    %31 = arith.mulf %27, %30 : vector<1x128xf32>
    %32 = vector.broadcast %31 : vector<1x128xf32> to vector<16x128xf32>
    %33 = arith.mulf %21, %32 : vector<16x128xf32>
    %c0_18 = arith.constant 0 : index
    %c0_19 = arith.constant 0 : index
    %34 = vector.load %arg6[%c0_18, %c0_19] : memref<1x128xf32, #tpu.memory_space<vmem>>, vector<1x128xf32>
    %35 = vector.broadcast %34 : vector<1x128xf32> to vector<16x128xf32>
    %36 = arith.addf %33, %35 : vector<16x128xf32>
    %c0_20 = arith.constant 0 : index
    %c0_21 = arith.constant 0 : index
    %37 = vector.load %arg7[%c0_20, %c0_21] : memref<128x128xf32, #tpu.memory_space<vmem>>, vector<128x128xf32>
    %cst_22 = arith.constant dense<0.000000e+00> : vector<16x128xf32>
    %38 = tpu.matmul %36, %37, %cst_22 {dimension_numbers = #tpu.dot_dimension_numbers<[1], [0], [0], [1], [0, 0, 1, 1], [], []>} : vector<16x128xf32>, vector<128x128xf32>, vector<16x128xf32> -> vector<16x128xf32>
    %39 = vector.broadcast %1 : vector<16x1xf32> to vector<16x128xf32>
    %40 = arith.mulf %39, %38 : vector<16x128xf32>
    %41 = arith.truncf %40 : vector<16x128xf32> to vector<16x128xbf16>
    %cst_23 = arith.constant dense<0.000000e+00> : vector<16x128xf32>
    %42 = tpu.matmul %0, %41, %cst_23 {dimension_numbers = #tpu.dot_dimension_numbers<[1], [0], [0], [1], [0, 0, 1, 1], [], []>} : vector<16x16xbf16>, vector<16x128xbf16>, vector<16x128xf32> -> vector<16x128xf32>
    %43 = vector.broadcast %1 : vector<16x1xf32> to vector<16x128xf32>
    %44 = arith.mulf %43, %42 : vector<16x128xf32>
    %c0_24 = arith.constant 0 : index
    %c0_25 = arith.constant 0 : index
    %45 = vector.load %arg8[%c0_24, %c0_25] : memref<1x128xf32, #tpu.memory_space<vmem>>, vector<1x128xf32>
    %46 = vector.broadcast %45 : vector<1x128xf32> to vector<16x128xf32>
    %47 = arith.addf %44, %46 : vector<16x128xf32>
    %cst_26 = arith.constant 0.000000e+00 : f32
    %48 = vector.broadcast %cst_26 : f32 to vector<16x128xf32>
    %49 = arith.maximumf %47, %48 : vector<16x128xf32>
    %cst_27 = arith.constant dense<0.000000e+00> : vector<128xf32>
    %50 = vector.multi_reduction <add>, %49, %cst_27 [0] : vector<16x128xf32> to vector<128xf32>
    %51 = vector.shape_cast %50 : vector<128xf32> to vector<1x128xf32>
    %cst_28 = arith.constant 1.600000e+01 : f32
    %52 = vector.broadcast %cst_28 : f32 to vector<1x128xf32>
    %53 = arith.divf %51, %52 : vector<1x128xf32>
    %54 = vector.broadcast %53 : vector<1x128xf32> to vector<16x128xf32>
    %55 = arith.subf %49, %54 : vector<16x128xf32>
    %56 = arith.mulf %55, %55 : vector<16x128xf32>
    %cst_29 = arith.constant dense<0.000000e+00> : vector<128xf32>
    %57 = vector.multi_reduction <add>, %56, %cst_29 [0] : vector<16x128xf32> to vector<128xf32>
    %58 = vector.shape_cast %57 : vector<128xf32> to vector<1x128xf32>
    %cst_30 = arith.constant 1.600000e+01 : f32
    %59 = vector.broadcast %cst_30 : f32 to vector<1x128xf32>
    %60 = arith.divf %58, %59 : vector<1x128xf32>
    %c0_31 = arith.constant 0 : index
    %c0_32 = arith.constant 0 : index
    %61 = vector.load %arg9[%c0_31, %c0_32] : memref<1x128xf32, #tpu.memory_space<vmem>>, vector<1x128xf32>
    %cst_33 = arith.constant 9.99999974E-6 : f32
    %62 = vector.broadcast %cst_33 : f32 to vector<1x128xf32>
    %63 = arith.addf %60, %62 : vector<1x128xf32>
    %64 = math.rsqrt %63 : vector<1x128xf32>
    %65 = arith.mulf %61, %64 : vector<1x128xf32>
    %66 = vector.broadcast %65 : vector<1x128xf32> to vector<16x128xf32>
    %67 = arith.mulf %55, %66 : vector<16x128xf32>
    %c0_34 = arith.constant 0 : index
    %c0_35 = arith.constant 0 : index
    %68 = vector.load %arg10[%c0_34, %c0_35] : memref<1x128xf32, #tpu.memory_space<vmem>>, vector<1x128xf32>
    %69 = vector.broadcast %68 : vector<1x128xf32> to vector<16x128xf32>
    %70 = arith.addf %67, %69 : vector<16x128xf32>
    %c0_36 = arith.constant 0 : index
    %c0_37 = arith.constant 0 : index
    %71 = vector.load %arg11[%c0_36, %c0_37] : memref<128x128xf32, #tpu.memory_space<vmem>>, vector<128x128xf32>
    %cst_38 = arith.constant dense<0.000000e+00> : vector<16x128xf32>
    %72 = tpu.matmul %70, %71, %cst_38 {dimension_numbers = #tpu.dot_dimension_numbers<[1], [0], [0], [1], [0, 0, 1, 1], [], []>} : vector<16x128xf32>, vector<128x128xf32>, vector<16x128xf32> -> vector<16x128xf32>
    %73 = vector.broadcast %1 : vector<16x1xf32> to vector<16x128xf32>
    %74 = arith.mulf %73, %72 : vector<16x128xf32>
    %75 = arith.truncf %74 : vector<16x128xf32> to vector<16x128xbf16>
    %cst_39 = arith.constant dense<0.000000e+00> : vector<16x128xf32>
    %76 = tpu.matmul %0, %75, %cst_39 {dimension_numbers = #tpu.dot_dimension_numbers<[1], [0], [0], [1], [0, 0, 1, 1], [], []>} : vector<16x16xbf16>, vector<16x128xbf16>, vector<16x128xf32> -> vector<16x128xf32>
    %77 = vector.broadcast %1 : vector<16x1xf32> to vector<16x128xf32>
    %78 = arith.mulf %77, %76 : vector<16x128xf32>
    %c0_40 = arith.constant 0 : index
    %c0_41 = arith.constant 0 : index
    %79 = vector.load %arg12[%c0_40, %c0_41] : memref<1x128xf32, #tpu.memory_space<vmem>>, vector<1x128xf32>
    %80 = vector.broadcast %79 : vector<1x128xf32> to vector<16x128xf32>
    %81 = arith.addf %78, %80 : vector<16x128xf32>
    %cst_42 = arith.constant 0.000000e+00 : f32
    %82 = vector.broadcast %cst_42 : f32 to vector<16x128xf32>
    %83 = arith.maximumf %81, %82 : vector<16x128xf32>
    %cst_43 = arith.constant dense<0.000000e+00> : vector<128xf32>
    %84 = vector.multi_reduction <add>, %83, %cst_43 [0] : vector<16x128xf32> to vector<128xf32>
    %85 = vector.shape_cast %84 : vector<128xf32> to vector<1x128xf32>
    %cst_44 = arith.constant 1.600000e+01 : f32
    %86 = vector.broadcast %cst_44 : f32 to vector<1x128xf32>
    %87 = arith.divf %85, %86 : vector<1x128xf32>
    %88 = vector.broadcast %87 : vector<1x128xf32> to vector<16x128xf32>
    %89 = arith.subf %83, %88 : vector<16x128xf32>
    %90 = arith.mulf %89, %89 : vector<16x128xf32>
    %cst_45 = arith.constant dense<0.000000e+00> : vector<128xf32>
    %91 = vector.multi_reduction <add>, %90, %cst_45 [0] : vector<16x128xf32> to vector<128xf32>
    %92 = vector.shape_cast %91 : vector<128xf32> to vector<1x128xf32>
    %cst_46 = arith.constant 1.600000e+01 : f32
    %93 = vector.broadcast %cst_46 : f32 to vector<1x128xf32>
    %94 = arith.divf %92, %93 : vector<1x128xf32>
    %c0_47 = arith.constant 0 : index
    %c0_48 = arith.constant 0 : index
    %95 = vector.load %arg13[%c0_47, %c0_48] : memref<1x128xf32, #tpu.memory_space<vmem>>, vector<1x128xf32>
    %cst_49 = arith.constant 9.99999974E-6 : f32
    %96 = vector.broadcast %cst_49 : f32 to vector<1x128xf32>
    %97 = arith.addf %94, %96 : vector<1x128xf32>
    %98 = math.rsqrt %97 : vector<1x128xf32>
    %99 = arith.mulf %95, %98 : vector<1x128xf32>
    %100 = vector.broadcast %99 : vector<1x128xf32> to vector<16x128xf32>
    %101 = arith.mulf %89, %100 : vector<16x128xf32>
    %c0_50 = arith.constant 0 : index
    %c0_51 = arith.constant 0 : index
    %102 = vector.load %arg14[%c0_50, %c0_51] : memref<1x128xf32, #tpu.memory_space<vmem>>, vector<1x128xf32>
    %103 = vector.broadcast %102 : vector<1x128xf32> to vector<16x128xf32>
    %104 = arith.addf %101, %103 : vector<16x128xf32>
    %c0_52 = arith.constant 0 : index
    %c0_53 = arith.constant 0 : index
    %105 = vector.load %arg15[%c0_52, %c0_53] : memref<16x128xf32, #tpu.memory_space<vmem>>, vector<16x128xf32>
    tpu.vector_store %arg15[%c0_52, %c0_53], %104 {strides = array<i32>} : memref<16x128xf32, #tpu.memory_space<vmem>>, vector<16x128xf32>,
    return
  }
}

</mosaic_0001>

<bundles_post_ra>
// kernel: gnn_forward.1
= control target key start
LH: loop header
LB: loop body
LE: loop exit
PB: predicated region body
PF: predicated region fallthrough
CT: control target
= control target key end

     0   :  { %v892_v2 = vmov 0   ;;  %s1205_s0 = inlined_call_operand.vmem [shape: f32[16,128], index: 0, kind: input, shape index: {}]   ;;  %s1206_s1 = inlined_call_operand.vmem [shape: bf16[16,16], index: 1, kind: input, shape index: {}]   ;;  %s1207_s2 = inlined_call_operand.vmem [shape: f32[16,1], index: 2, kind: input, shape index: {}]   ;;  %s1208_s3 = inlined_call_operand.vmem [shape: f32[128,128], index: 3, kind: input, shape index: {}]   ;;  %s1209_s4 = inlined_call_operand.vmem [shape: f32[1,128], index: 4, kind: input, shape index: {}]   ;;  %s1210_s5 = inlined_call_operand.vmem [shape: f32[1,128], index: 5, kind: input, shape index: {}]   ;;  %s1211_s6 = inlined_call_operand.vmem [shape: f32[1,128], index: 6, kind: input, shape index: {}]   ;;  %s1212_s7 = inlined_call_operand.vmem [shape: f32[128,128], index: 7, kind: input, shape index: {}]   ;;  %s1213_s8 = inlined_call_operand.vmem [shape: f32[1,128], index: 8, kind: input, shape index: {}]   ;;  %s1214_s9 = inlined_call_operand.vmem [shape: f32[1,128], index: 9, kind: input, shape index: {}]   ;;  %s1215_s10 = inlined_call_operand.vmem [shape: f32[1,128], index: 10, kind: input, shape index: {}]   ;;  %s1216_s11 = inlined_call_operand.vmem [shape: f32[128,128], index: 11, kind: input, shape index: {}]   ;;  %s1217_s12 = inlined_call_operand.vmem [shape: f32[1,128], index: 12, kind: input, shape index: {}]   ;;  %s1218_s13 = inlined_call_operand.vmem [shape: f32[1,128], index: 13, kind: input, shape index: {}]   ;;  %s1219_s14 = inlined_call_operand.vmem [shape: f32[1,128], index: 14, kind: input, shape index: {}]   ;;  %s1220_s15 = inlined_call_operand.hbm [shape: f32[16,128], index: 15, kind: output, shape index: {}]  }
   0x1   :  { %v73_v0 = vld [vmem:[%s1208_s3 + $0x78] sm:$0xff]  ;;  %v72_v1 = vld [vmem:[%s1208_s3 + $0x70] sm:$0xff]  ;;  %862 = vset.pattern.permute.xlu0 %v892_v2  ;;  %v71_v3 = vld [vmem:[%s1208_s3 + $0x68] sm:$0xff] }
   0x2   :  { %733 = vmatprep.subr.mxu0 %v73_v0  ;;  %v70_v4 = vld [vmem:[%s1208_s3 + $0x60] sm:$0xff]  ;;  %v69_v6 = vld [vmem:[%s1208_s3 + $0x58] sm:$0xff] }
   0x3   :  { %734 = vmatpush3.msra.mxu0 %v73_v0  ;;  %v56_v5 = vld [vmem:[%s1205_s0] sm:$0xff] }
   0x4   :  { %735 = vmatprep.subr.mxu0 %v72_v1  ;;  %765 = vmatprep.mubr.f32.mxu0 %v56_v5  ;;  %v54_v7 = vld [vmem:[%s1207_s2] sm:$0xff] }
   0x5   :  { %736 = vmatpush3.msra.mxu0 %v72_v1  ;;  %151 = vperm.xlu0 %862, %v54_v7  }
   0x6   :  { %737 = vmatprep.subr.mxu0 %v71_v3 }
   0x7   :  { %738 = vmatpush3.msra.mxu0 %v71_v3 }
   0x8   :  { %739 = vmatprep.subr.mxu0 %v70_v4 }
   0x9   :  { %20 = vsyncpa [#allocation3], 0  ;;  %740 = vmatpush3.msra.mxu0 %v70_v4  ;;  %v68_v8 = vld [vmem:[%s1208_s3 + $0x50] sm:$0xff]  ;;  %v55_v9 = vld [vmem:[%s1207_s2 + $0x8] sm:$0xff]  ;;  %v893_v21 = vmov 0.0   ;;  %vm894_vm0 = vmmov 0  }
   0xa   :  { %741 = vmatprep.subr.mxu0 %v69_v6  ;;  %v67_v10 = vld [vmem:[%s1208_s3 + $0x48] sm:$0xff]  ;;  %156 = vperm.xlu0 %862, %v55_v9   ;;  %v66_v11 = vld [vmem:[%s1208_s3 + $0x40] sm:$0xff]  ;;  %v65_v12 = vld [vmem:[%s1208_s3 + $0x38] sm:$0xff]  ;;  %vm167_vm1 = vcmask 130048   ;;  %s895_s20 = smov [#allocation2]  }
   0xb   :  { %742 = vmatpush3.msra.mxu0 %v69_v6  ;;  %v64_v13 = vld [vmem:[%s1208_s3 + $0x30] sm:$0xff]  ;;  %v63_v14 = vld [vmem:[%s1208_s3 + $0x28] sm:$0xff]  ;;  %v62_v15 = vld [vmem:[%s1208_s3 + $0x20] sm:$0xff]  ;;  %768 = vmatprep.subr.bf16.mxu1 %v893_v21  ;;  %s652_s21 = sshll.u32 %s895_s20, 4  ;;  %s653_s21 = int_to_ptr.vmem [resolvable:$true] %s652_s21 }
   0xc   :  { %743 = vmatprep.subr.mxu0 %v68_v8  ;;  %v61_v16 = vld [vmem:[%s1208_s3 + $0x18] sm:$0xff]  ;;  %v60_v17 = vld [vmem:[%s1208_s3 + $0x10] sm:$0xff]  ;;  %v59_v18 = vld [vmem:[%s1208_s3 + $0x8] sm:$0xff]  ;;  %770 = vmatprep.mubr.msk.bf16.mxu1 %vm894_vm0, %v893_v21  ;;  %s870_s24 = scalar_lea.vmem %s653_s21, 256  ;;  %p875_p1 = scmp.lt.s32.totalorder %s653_s21, %s653_s21 }
   0xd   :  { %744 = vmatpush3.msra.mxu0 %v68_v8  ;;  %v58_v19 = vld [vmem:[%s1208_s3] sm:$0xff]  ;;  %v57_v20 = vld [vmem:[%s1205_s0 + $0x8] sm:$0xff]  ;;  %v282_v30 = vld [vmem:[%s1212_s7 + $0x78] sm:$0xff]  ;;  %p871_p0 = scmp.ne.s32.totalorder %s653_s21, %s870_s24  ;;  %p876_p2 = scmp.lt.s32.totalorder %s870_s24, %s870_s24 }
   0xe   :  { %745 = vmatprep.subr.mxu0 %v67_v10  ;;  %v1050_v29 = vld [vmem:[%s1206_s1] sm:$0xff]   ;;  %v281_v31 = vld [vmem:[%s1212_s7 + $0x70] sm:$0xff]  ;;  %v280_v32 = vld [vmem:[%s1212_s7 + $0x68] sm:$0xff] }
   0xf   :  { %746 = vmatpush3.msra.mxu0 %v67_v10  ;;  %v279_v33 = vld [vmem:[%s1212_s7 + $0x60] sm:$0xff]  ;;  %v278_v34 = vld [vmem:[%s1212_s7 + $0x58] sm:$0xff]  ;;  %v277_v35 = vld [vmem:[%s1212_s7 + $0x50] sm:$0xff]  ;;  %p877_p3 = por %p876_p2, %p875_p1 }
  0x10   :  { %747 = vmatprep.subr.mxu0 %v66_v11  ;;  %v276_v36 = vld [vmem:[%s1212_s7 + $0x48] sm:$0xff]  ;;  %v275_v37 = vld [vmem:[%s1212_s7 + $0x40] sm:$0xff]  ;;  %v274_v38 = vld [vmem:[%s1212_s7 + $0x38] sm:$0xff] }
  0x11   :  { %748 = vmatpush3.msra.mxu0 %v66_v11  ;;  %v273_v39 = vld [vmem:[%s1212_s7 + $0x30] sm:$0xff]  ;;  %v272_v40 = vld [vmem:[%s1212_s7 + $0x28] sm:$0xff]  ;;  %v271_v41 = vld [vmem:[%s1212_s7 + $0x20] sm:$0xff]  ;;  %p878_p4 = pnand %p877_p3, %p871_p0 }
  0x12   :  { %749 = vmatprep.subr.mxu0 %v65_v12  ;;  %v270_v42 = vld [vmem:[%s1212_s7 + $0x18] sm:$0xff]  ;;  %v269_v43 = vld [vmem:[%s1212_s7 + $0x10] sm:$0xff]  ;;  %v268_v44 = vld [vmem:[%s1212_s7 + $0x8] sm:$0xff] }
  0x13   :  { %750 = vmatpush3.msra.mxu0 %v65_v12  ;;  %v267_v45 = vld [vmem:[%s1212_s7] sm:$0xff] }
  0x14   :  { %751 = vmatprep.subr.mxu0 %v64_v13  ;;  %v665_v48 = vld [vmem:[%s1209_s4] ss:$0 sm:$0xff] }
  0x15   :  { %752 = vmatpush3.msra.mxu0 %v64_v13 }
  0x16   :  { %753 = vmatprep.subr.mxu0 %v63_v14 }
  0x17   :  { %754 = vmatpush3.msra.mxu0 %v63_v14  ;;  %v251_v14 = vlaneseq }
  0x18   :  { %755 = vmatprep.subr.mxu0 %v62_v15 }
  0x19   :  { %756 = vmatpush3.msra.mxu0 %v62_v15  ;;  %v252_v15 = vshrl.u32 %v251_v14, 7 }
  0x1a   :  { %757 = vmatprep.subr.mxu0 %v61_v16 }
  0x1b   :  { %758 = vmatpush3.msra.mxu0 %v61_v16  ;;  %v246_v16 = vld [vmem:[%s1210_s5] sm:$0x1] }
  0x1c   :  { %759 = vmatprep.subr.mxu0 %v60_v17 }
  0x1d   :  { %760 = vmatpush3.msra.mxu0 %v60_v17  ;;  %v1111_v17 = vsub.s32 0, %v252_v15 }
  0x1e   :  { %761 = vmatprep.subr.mxu0 %v59_v18 }
  0x1f   :  { %762 = vmatpush3.msra.mxu0 %v59_v18 }
  0x20   :  { %763 = vmatprep.subr.mxu0 %v58_v19 }
  0x21   :  { %764 = vmatpush3.msra.mxu0 %v58_v19 }
  0x22   :  { %766 = vmatmul.mubr.f32.vlgmr.msra.gmra.mxu0 %v57_v20 }
  0x80   :  { %v1041_v22 = vpop.permute.xlu0 %151 }
  0x85   :  { %v1043_v24 = vpop.permute.xlu0 %156 }
  0xe2   :  { %v767_v23 = vpop.f32.mrf.mxu0 }
  0xe3   :  { %v160_v26 = vmul.f32 %v767_v23, %v1043_v24  ;;  %v666_v23 = vld [vmem:[%s1211_s6] ss:$0 sm:$0xff] }
  0xe4   :  { %v140_v25 = vpop.f32.mrf.mxu0 }
  0xe5   :  { %v159_v27 = vmul.f32 %v1041_v22, %v140_v25 }
  0xe7   :  { %v161_v28 = vpack.c.bf16 %v160_v26, %v159_v27 }
  0xe9   :  { %769 = vmatpush3.bf16.msra.mxu1 %v161_v28 }
  0xea   :  { %774 = vmatprep.subr.mxu1 %v282_v30 }
  0xec   :  { %771 = vmatmul.mubr.msk.bf16.vlgmr.msra.gmra.mxu1 %vm167_vm1, %v1050_v29 }
  0xed   :  { %775 = vmatpush3.msra.mxu1 %v282_v30 }
  0xee   :  { %776 = vmatprep.subr.mxu1 %v281_v31 }
  0xef   :  { %777 = vmatpush3.msra.mxu1 %v281_v31 }
  0xf0   :  { %778 = vmatprep.subr.mxu1 %v280_v32 }
  0xf1   :  { %779 = vmatpush3.msra.mxu1 %v280_v32 }
  0xf2   :  { %780 = vmatprep.subr.mxu1 %v279_v33 }
  0xf3   :  { %781 = vmatpush3.msra.mxu1 %v279_v33 }
  0xf4   :  { %782 = vmatprep.subr.mxu1 %v278_v34 }
  0xf5   :  { %783 = vmatpush3.msra.mxu1 %v278_v34 }
  0xf6   :  { %784 = vmatprep.subr.mxu1 %v277_v35 }
  0xf7   :  { %785 = vmatpush3.msra.mxu1 %v277_v35  ;;  %v471_v35 = vld [vmem:[%s1216_s11 + $0x78] sm:$0xff] }
  0xf8   :  { %786 = vmatprep.subr.mxu1 %v276_v36  ;;  %815 = vmatprep.subr.mxu0 %v471_v35 }
  0xf9   :  { %787 = vmatpush3.msra.mxu1 %v276_v36  ;;  %816 = vmatpush3.msra.mxu0 %v471_v35  ;;  %v470_v36 = vld [vmem:[%s1216_s11 + $0x70] sm:$0xff] }
  0xfa   :  { %788 = vmatprep.subr.mxu1 %v275_v37  ;;  %817 = vmatprep.subr.mxu0 %v470_v36 }
  0xfb   :  { %789 = vmatpush3.msra.mxu1 %v275_v37  ;;  %818 = vmatpush3.msra.mxu0 %v470_v36  ;;  %v469_v37 = vld [vmem:[%s1216_s11 + $0x68] sm:$0xff] }
  0xfc   :  { %790 = vmatprep.subr.mxu1 %v274_v38  ;;  %819 = vmatprep.subr.mxu0 %v469_v37 }
  0xfd   :  { %791 = vmatpush3.msra.mxu1 %v274_v38  ;;  %820 = vmatpush3.msra.mxu0 %v469_v37  ;;  %v467_v38 = vld [vmem:[%s1216_s11 + $0x58] sm:$0xff] }
  0xfe   :  { %792 = vmatprep.subr.mxu1 %v273_v39 }
  0xff   :  { %793 = vmatpush3.msra.mxu1 %v273_v39  ;;  %v466_v39 = vld [vmem:[%s1216_s11 + $0x50] sm:$0xff] }
 0x100   :  { %794 = vmatprep.subr.mxu1 %v272_v40 }
 0x101   :  { %795 = vmatpush3.msra.mxu1 %v272_v40  ;;  %v465_v40 = vld [vmem:[%s1216_s11 + $0x48] sm:$0xff] }
 0x102   :  { %796 = vmatprep.subr.mxu1 %v271_v41 }
 0x103   :  { %797 = vmatpush3.msra.mxu1 %v271_v41  ;;  %v464_v41 = vld [vmem:[%s1216_s11 + $0x40] sm:$0xff] }
 0x104   :  { %798 = vmatprep.subr.mxu1 %v270_v42 }
 0x105   :  { %799 = vmatpush3.msra.mxu1 %v270_v42  ;;  %v463_v42 = vld [vmem:[%s1216_s11 + $0x38] sm:$0xff] }
 0x106   :  { %800 = vmatprep.subr.mxu1 %v269_v43 }
 0x107   :  { %801 = vmatpush3.msra.mxu1 %v269_v43  ;;  %v462_v43 = vld [vmem:[%s1216_s11 + $0x30] sm:$0xff] }
 0x108   :  { %802 = vmatprep.subr.mxu1 %v268_v44 }
 0x109   :  { %803 = vmatpush3.msra.mxu1 %v268_v44  ;;  %v461_v44 = vld [vmem:[%s1216_s11 + $0x28] sm:$0xff] }
 0x10a   :  { %804 = vmatprep.subr.mxu1 %v267_v45 }
 0x10b   :  { %805 = vmatpush3.msra.mxu1 %v267_v45  ;;  %v460_v45 = vld [vmem:[%s1216_s11 + $0x20] sm:$0xff] }
 0x10c   :  { %809 = vmatprep.subr.bf16.mxu1 %v893_v21 }
 0x1ac   :  { %v205_v46 = vpop.f32.mrf.mxu1 }
 0x1ad   :  { %v212_v47 = vmul.f32 %v205_v46, %v1041_v22  ;;  %v459_v46 = vld [vmem:[%s1216_s11 + $0x18] sm:$0xff] }
 0x1ae   :  { %v772_v49 = vpop.f32.mrf.mxu1 }
 0x1af   :  { %v221_v51 = vadd.f32 %v665_v48, %v212_v47  ;;  %v458_v47 = vld [vmem:[%s1216_s11 + $0x10] sm:$0xff]  ;;  %v456_v49 = vld [vmem:[%s1216_s11] sm:$0xff] }
 0x1b0   :  { %v208_v50 = vpop.f32.mrf.mxu1 }
 0x1b1   :  { %v213_v52 = vmul.f32 %v208_v50, %v1043_v24  ;;  %v223_v55 = vmax.f32 %v221_v51, 0.0 }
 0x1b2   :  { %v773_v53 = vpop.f32.mrf.mxu1 }
 0x1b3   :  { %v222_v54 = vadd.f32 %v665_v48, %v213_v52  ;;  %v457_v48 = vld [vmem:[%s1216_s11 + $0x8] sm:$0xff]  ;;  %v668_v52 = vld [vmem:[%s1213_s8] ss:$0 sm:$0xff] }
 0x1b5   :  { %v224_v56 = vmax.f32 %v222_v54, 0.0 }
 0x1b7   :  { %v225_v57 = vadd.f32 %v224_v56, %v223_v55 }
 0x1b9   :  { %v226_v58 = vrot.slane %v225_v57, 4 }
 0x1bb   :  { %v227_v59 = vadd.f32 %v226_v58, %v225_v57 }
 0x1bd   :  { %v228_v60 = vrot.slane %v227_v59, 2 }
 0x1bf   :  { %v229_v61 = vadd.f32 %v228_v60, %v227_v59 }
 0x1c1   :  { %v230_v62 = vrot.slane %v229_v61, 1 }
 0x1c3   :  { %v231_v63 = vadd.f32 %v230_v62, %v229_v61 }
 0x1c5   :  { %v233_v0 = vmul.f32 0.0625, %v231_v63 }
 0x1c7   :  { %v234_v1 = vsub.f32 %v223_v55, %v233_v0  ;;  %v235_v2 = vsub.f32 %v224_v56, %v233_v0 }
 0x1c9   :  { %v236_v3 = vmul.f32 %v234_v1, %v234_v1  ;;  %v237_v4 = vmul.f32 %v235_v2, %v235_v2 }
 0x1cb   :  { %v238_v5 = vadd.f32 %v237_v4, %v236_v3 }
 0x1cd   :  { %v239_v6 = vrot.slane %v238_v5, 4 }
 0x1cf   :  { %v240_v7 = vadd.f32 %v239_v6, %v238_v5 }
 0x1d1   :  { %v241_v8 = vrot.slane %v240_v7, 2 }
 0x1d3   :  { %v242_v9 = vadd.f32 %v241_v8, %v240_v7 }
 0x1d5   :  { %v243_v10 = vrot.slane %v242_v9, 1 }
 0x1d7   :  { %v244_v11 = vadd.f32 %v243_v10, %v242_v9 }
 0x1d9   :  { %v245_v12 = vmul.f32 0.0625, %v244_v11 }
 0x1db   :  { %v247_v13 = vadd.f32 1e-05, %v245_v12 }
 0x1dd   :  { %864 = vrsqrt.f32 %v247_v13 }
 0x1ea   :  { %v865_v18 = vpop.eup %864 }
 0x1eb   :  { %v249_v19 = vmul.f32 %v865_v18, %v246_v16 }
 0x1ed   :  { %v254_v20 = vrot.slane %v249_v19, %v1111_v17  ;;  %v435_v19 = vld [vmem:[%s1214_s9] sm:$0x1] }
 0x1ef   :  { %v257_v25 = vmul.f32 %v254_v20, %v235_v2  ;;  %v256_v26 = vmul.f32 %v254_v20, %v234_v1 }
 0x1f1   :  { %v265_v27 = vadd.f32 %v666_v23, %v256_v26  ;;  %v266_v28 = vadd.f32 %v666_v23, %v257_v25  ;;  %v669_v26 = vld [vmem:[%s1215_s10] ss:$0 sm:$0xff] }
 0x1f3   :  { %806 = vmatprep.mubr.f32.mxu1 %v265_v27 }
 0x1f4   :  { %807 = vmatmul.mubr.f32.vlgmr.msra.gmra.mxu1 %v266_v28 }
 0x1f5   :  { %811 = vmatprep.mubr.msk.bf16.mxu1 %vm894_vm0, %v893_v21 }
 0x2b4   :  { %v808_v30 = vpop.f32.mrf.mxu1 }
 0x2b5   :  { %v359_v32 = vmul.f32 %v808_v30, %v1043_v24 }
 0x2b6   :  { %v349_v31 = vpop.f32.mrf.mxu1 }
 0x2b7   :  { %v358_v33 = vmul.f32 %v349_v31, %v1041_v22 }
 0x2b9   :  { %v360_v34 = vpack.c.bf16 %v359_v32, %v358_v33 }
 0x2bb   :  { %810 = vmatpush3.bf16.msra.mxu1 %v360_v34 }
 0x2bc   :  { %850 = vmatprep.subr.bf16.mxu1 %v893_v21 }
 0x2be   :  { %812 = vmatmul.mubr.msk.bf16.vlgmr.msra.gmra.mxu1 %vm167_vm1, %v1050_v29 }
 0x2bf   :  { %852 = vmatprep.mubr.msk.bf16.mxu1 %vm894_vm0, %v893_v21  ;;  %v468_v21 = vld [vmem:[%s1216_s11 + $0x60] sm:$0xff] }
 0x2c0   :  { %821 = vmatprep.subr.mxu0 %v468_v21 }
 0x2c1   :  { %822 = vmatpush3.msra.mxu0 %v468_v21 }
 0x2c2   :  { %823 = vmatprep.subr.mxu0 %v467_v38 }
 0x2c3   :  { %824 = vmatpush3.msra.mxu0 %v467_v38  ;;  %v671_v38 = vld [vmem:[%s1217_s12] ss:$0 sm:$0xff] }
 0x2c4   :  { %825 = vmatprep.subr.mxu0 %v466_v39 }
 0x2c5   :  { %826 = vmatpush3.msra.mxu0 %v466_v39 }
 0x2c6   :  { %827 = vmatprep.subr.mxu0 %v465_v40 }
 0x2c7   :  { %828 = vmatpush3.msra.mxu0 %v465_v40 }
 0x2c8   :  { %829 = vmatprep.subr.mxu0 %v464_v41 }
 0x2c9   :  { %830 = vmatpush3.msra.mxu0 %v464_v41 }
 0x2ca   :  { %831 = vmatprep.subr.mxu0 %v463_v42 }
 0x2cb   :  { %832 = vmatpush3.msra.mxu0 %v463_v42 }
 0x2cc   :  { %833 = vmatprep.subr.mxu0 %v462_v43 }
 0x2cd   :  { %834 = vmatpush3.msra.mxu0 %v462_v43 }
 0x2ce   :  { %835 = vmatprep.subr.mxu0 %v461_v44 }
 0x2cf   :  { %836 = vmatpush3.msra.mxu0 %v461_v44 }
 0x2d0   :  { %837 = vmatprep.subr.mxu0 %v460_v45 }
 0x2d1   :  { %838 = vmatpush3.msra.mxu0 %v460_v45 }
 0x2d2   :  { %839 = vmatprep.subr.mxu0 %v459_v46 }
 0x2d3   :  { %840 = vmatpush3.msra.mxu0 %v459_v46 }
 0x2d4   :  { %841 = vmatprep.subr.mxu0 %v458_v47 }
 0x2d5   :  { %842 = vmatpush3.msra.mxu0 %v458_v47 }
 0x2d6   :  { %843 = vmatprep.subr.mxu0 %v457_v48 }
 0x2d7   :  { %844 = vmatpush3.msra.mxu0 %v457_v48 }
 0x2d8   :  { %845 = vmatprep.subr.mxu0 %v456_v49 }
 0x2d9   :  { %846 = vmatpush3.msra.mxu0 %v456_v49 }
 0x37e   :  { %v395_v50 = vpop.f32.mrf.mxu1 }
 0x37f   :  { %v402_v51 = vmul.f32 %v395_v50, %v1041_v22 }
 0x380   :  { %v813_v53 = vpop.f32.mrf.mxu1 }
 0x381   :  { %v411_v55 = vadd.f32 %v668_v52, %v402_v51 }
 0x382   :  { %v398_v54 = vpop.f32.mrf.mxu1 }
 0x383   :  { %v403_v56 = vmul.f32 %v398_v54, %v1043_v24  ;;  %v413_v59 = vmax.f32 %v411_v55, 0.0 }
 0x384   :  { %v814_v57 = vpop.f32.mrf.mxu1 }
 0x385   :  { %v412_v58 = vadd.f32 %v668_v52, %v403_v56 }
 0x387   :  { %v414_v60 = vmax.f32 %v412_v58, 0.0 }
 0x389   :  { %v415_v61 = vadd.f32 %v414_v60, %v413_v59 }
 0x38b   :  { %v416_v62 = vrot.slane %v415_v61, 4 }
 0x38d   :  { %v417_v63 = vadd.f32 %v416_v62, %v415_v61 }
 0x38f   :  { %v418_v0 = vrot.slane %v417_v63, 2 }
 0x391   :  { %v419_v1 = vadd.f32 %v418_v0, %v417_v63 }
 0x393   :  { %v420_v2 = vrot.slane %v419_v1, 1 }
 0x395   :  { %v421_v3 = vadd.f32 %v420_v2, %v419_v1  ;;  %v624_v1 = vld [vmem:[%s1218_s13] sm:$0x1] }
 0x397   :  { %v422_v4 = vmul.f32 0.0625, %v421_v3 }
 0x399   :  { %v423_v5 = vsub.f32 %v413_v59, %v422_v4  ;;  %v424_v6 = vsub.f32 %v414_v60, %v422_v4 }
 0x39b   :  { %v425_v7 = vmul.f32 %v423_v5, %v423_v5  ;;  %v426_v8 = vmul.f32 %v424_v6, %v424_v6 }
 0x39d   :  { %v427_v9 = vadd.f32 %v426_v8, %v425_v7 }
 0x39f   :  { %v428_v10 = vrot.slane %v427_v9, 4 }
 0x3a1   :  { %v429_v11 = vadd.f32 %v428_v10, %v427_v9 }
 0x3a3   :  { %v430_v12 = vrot.slane %v429_v11, 2 }
 0x3a5   :  { %v431_v13 = vadd.f32 %v430_v12, %v429_v11 }
 0x3a7   :  { %v432_v14 = vrot.slane %v431_v13, 1 }
 0x3a9   :  { %v433_v15 = vadd.f32 %v432_v14, %v431_v13 }
 0x3ab   :  { %v434_v16 = vmul.f32 0.0625, %v433_v15 }
 0x3ad   :  { %v436_v18 = vadd.f32 1e-05, %v434_v16 }
 0x3af   :  { %866 = vrsqrt.f32 %v436_v18 }
 0x3bc   :  { %v867_v20 = vpop.eup %866 }
 0x3bd   :  { %v438_v23 = vmul.f32 %v867_v20, %v435_v19 }
 0x3bf   :  { %v443_v25 = vrot.slane %v438_v23, %v1111_v17 }
 0x3c1   :  { %v446_v27 = vmul.f32 %v443_v25, %v424_v6  ;;  %v445_v28 = vmul.f32 %v443_v25, %v423_v5  ;;  %v672_v5 = vld [vmem:[%s1219_s14] ss:$0 sm:$0xff] }
 0x3c3   :  { %v454_v30 = vadd.f32 %v669_v26, %v445_v28  ;;  %v455_v31 = vadd.f32 %v669_v26, %v446_v27 }
 0x3c5   :  { %847 = vmatprep.mubr.f32.mxu0 %v454_v30 }
 0x3c6   :  { %848 = vmatmul.mubr.f32.vlgmr.msra.gmra.mxu0 %v455_v31 }
 0x486   :  { %v849_v32 = vpop.f32.mrf.mxu0 }
 0x487   :  { %v548_v34 = vmul.f32 %v849_v32, %v1043_v24 }
 0x488   :  { %v538_v33 = vpop.f32.mrf.mxu0 }
 0x489   :  { %v547_v35 = vmul.f32 %v538_v33, %v1041_v22 }
 0x48b   :  { %v549_v36 = vpack.c.bf16 %v548_v34, %v547_v35 }
 0x48d   :  { %851 = vmatpush3.bf16.msra.mxu1 %v549_v36 }
 0x490   :  { %853 = vmatmul.mubr.msk.bf16.vlgmr.msra.gmra.mxu1 %vm167_vm1, %v1050_v29 }
 0x550   :  { %v584_v37 = vpop.f32.mrf.mxu1 }
 0x551   :  { %v591_v21 = vmul.f32 %v584_v37, %v1041_v22 }
 0x552   :  { %v854_v39 = vpop.f32.mrf.mxu1 }
 0x553   :  { %v600_v41 = vadd.f32 %v671_v38, %v591_v21 }
 0x554   :  { %v587_v40 = vpop.f32.mrf.mxu1 }
 0x555   :  { %v592_v42 = vmul.f32 %v587_v40, %v1043_v24  ;;  %v602_v45 = vmax.f32 %v600_v41, 0.0 }
 0x556   :  { %v855_v43 = vpop.f32.mrf.mxu1 }
 0x557   :  { %v601_v44 = vadd.f32 %v671_v38, %v592_v42 }
 0x559   :  { %v603_v46 = vmax.f32 %v601_v44, 0.0 }
 0x55b   :  { %v604_v47 = vadd.f32 %v603_v46, %v602_v45 }
 0x55d   :  { %v605_v48 = vrot.slane %v604_v47, 4 }
 0x55f   :  { %v606_v49 = vadd.f32 %v605_v48, %v604_v47 }
 0x561   :  { %v607_v29 = vrot.slane %v606_v49, 2 }
 0x563   :  { %v608_v50 = vadd.f32 %v607_v29, %v606_v49 }
 0x565   :  { %v609_v51 = vrot.slane %v608_v50, 1 }
 0x567   :  { %v610_v22 = vadd.f32 %v609_v51, %v608_v50 }
 0x569   :  { %v611_v52 = vmul.f32 0.0625, %v610_v22 }
 0x56b   :  { %v612_v53 = vsub.f32 %v602_v45, %v611_v52  ;;  %v613_v54 = vsub.f32 %v603_v46, %v611_v52 }
 0x56d   :  { %v614_v55 = vmul.f32 %v612_v53, %v612_v53  ;;  %v615_v56 = vmul.f32 %v613_v54, %v613_v54 }
 0x56f   :  { %v616_v57 = vadd.f32 %v615_v56, %v614_v55 }
 0x571   :  { %v617_v58 = vrot.slane %v616_v57, 4 }
 0x573   :  { %v618_v59 = vadd.f32 %v617_v58, %v616_v57 }
 0x575   :  { %v619_v24 = vrot.slane %v618_v59, 2 }
 0x577   :  { %v620_v60 = vadd.f32 %v619_v24, %v618_v59 }
 0x579   :  { %v621_v61 = vrot.slane %v620_v60, 1 }
 0x57b   :  { %v622_v62 = vadd.f32 %v621_v61, %v620_v60 }
 0x57d   :  { %v623_v63 = vmul.f32 0.0625, %v622_v62 }
 0x57f   :  { %v625_v0 = vadd.f32 1e-05, %v623_v63 }
 0x581   :  { %868 = vrsqrt.f32 %v625_v0 }
 0x58e   :  { %v869_v2 = vpop.eup %868 }
 0x58f   :  { %v627_v3 = vmul.f32 %v869_v2, %v624_v1 }
 0x591   :  { %v632_v4 = vrot.slane %v627_v3, %v1111_v17 }
 0x593   :  { %v635_v6 = vmul.f32 %v632_v4, %v613_v54  ;;  %v634_v7 = vmul.f32 %v632_v4, %v612_v53 }
 0x595   :  { %v643_v8 = vadd.f32 %v672_v5, %v634_v7  ;;  %v644_v9 = vadd.f32 %v672_v5, %v635_v6 }
 0x597   :  { %645 = vst [vmem:[#allocation2] sm:$0xff] %v643_v8  ;;  %646 = vst [vmem:[#allocation2 + $0x8] sm:$0xff] %v644_v9 }
 0x598   :  { %881 = shalt.err (!%p878_p4)
}
 0x599   :  { %s896_s13 = smov 128   ;;  %s897_s4 = smov 8  }
 0x59a   :  { %658 = dma.vmem_to_hbm [thread:$0]  %s653_s21, 256, %s1220_s15, [#allocation3], %s896_s13, %s896_s13, %s897_s4  }
 0x59b   :  { %890 = dma.done.wait [#allocation3], 256  }
 0x59c   :  { %891 = vsyncadd [#allocation3], 4294967040 }
 0x59d   :  { %662 = vsyncpa [#allocation3], 1 }

</bundles_post_ra>
